<compile_context>
chip_gen: v7x
topology: tpu7x:2x2x1
jax: 0.10.0
libtpu: 0.0.40
codegen_flags: <defaults>
</compile_context>

<pallas_src>
import functools

import jax
import jax.numpy as jnp
import numpy as np
from jax.experimental import pallas as pl
from jax.experimental.pallas import tpu as pltpu


def _outblock_kernel(x_ref, w1_ref, b1_ref, w2_ref, b2_ref, o_ref,
                     *, H, W, Cin, Cmid):
    # x_ref  : (1, Cin, H*W)    VMEM  one batch element, spatial flattened
    # w1_ref : (Cmid*9, Cin, 1) VMEM  3x3 weight columns, idx = co*9+ky*3+kx
    # b1_ref : (Cmid,)          SMEM
    # w2_ref : (Cmid,)          SMEM  1x1 conv weights
    # b2_ref : (1,)             SMEM
    # o_ref  : (1, 1, H*W)      VMEM  lane-dense output block
    HW = H * W
    x = x_ref[0].astype(jnp.float32)                     # (Cin, HW)

    # Row / column indices of each flattened spatial position.
    lane = jax.lax.broadcasted_iota(jnp.int32, (1, HW), 1)
    if (W & (W - 1)) == 0:
        col = lane & (W - 1)
        row = lane >> int(np.log2(W))
    else:
        row = lane // W
        col = lane - row * W

    # Validity masks for reading the shifted neighbour (same zero padding).
    col_masks = {-1: col >= 1, 0: None, 1: col <= (W - 2)}
    row_masks = {-1: row >= 1, 0: None, 1: row <= (H - 2)}

    # dx-shifted, column-masked copies of the input, shared by all dy rows.
    # window(dy,dx)[p] = x[p + dy*W + dx] = roll(x, -(dy*W+dx))[p].
    xs = {0: x}
    for dx in (-1, 1):
        shifted = pltpu.roll(x, (-dx) % HW, 1)           # lane rotate (XLU)
        xs[dx] = jnp.where(col_masks[dx], shifted, 0.0)

    # 3x3 'same' conv: per tap, one (Cin,1) x (Cin,HW) broadcast multiply per
    # mid-channel, accumulated at full lane width and half sublane fill.
    accs = [None] * Cmid
    for dy in (-1, 0, 1):
        for dx in (-1, 0, 1):
            if dy == 0:
                win = xs[dx]
            else:
                win = pltpu.roll(xs[dx], (-dy * W) % HW, 1)
                win = jnp.where(row_masks[dy], win, 0.0)
            for co in range(Cmid):
                wcol = w1_ref[co * 9 + (dy + 1) * 3 + (dx + 1)]   # (Cin, 1)
                term = wcol * win                                 # (Cin, HW)
                accs[co] = term if accs[co] is None else accs[co] + term

    # Channel contraction (XLU sublane reduce) + bias + ReLU, then the 1x1
    # conv (+ bias + ReLU) as a short VPU chain.
    out = None
    for co in range(Cmid):
        h = jnp.sum(accs[co], axis=0, keepdims=True) + b1_ref[co]   # (1, HW)
        h = jnp.maximum(h, 0.0)
        t = w2_ref[co] * h
        out = t if out is None else out + t
    out = jnp.maximum(out + b2_ref[0], 0.0)
    o_ref[0] = out.astype(o_ref.dtype)


def outblock_forward(x_nchw, w1, b1, w2, b2):
    """x_nchw: [B, Cin, H, W]; w1: [Cmid, Cin, 3, 3]; b1: [Cmid];
    w2: [1, Cmid, 1, 1]; b2: [1].  Returns [B, 1, H, W]."""
    B, Cin, H, W = x_nchw.shape
    Cmid = w1.shape[0]
    HW = H * W

    x_flat = x_nchw.reshape(B, Cin, HW)                  # free reshape (NCHW)

    # (Cmid*9, Cin, 1) weight "columns": tap (co, ky, kx) -> row co*9+ky*3+kx,
    # element ci = w1[co, ci, ky, kx].
    w1_cols = jnp.transpose(w1.astype(jnp.float32),
                            (0, 2, 3, 1)).reshape(Cmid * 9, Cin)[..., None]
    b1k = b1.astype(jnp.float32).reshape(-1)             # (Cmid,)
    w2k = w2.astype(jnp.float32).reshape(-1)             # (Cmid,)
    b2k = b2.astype(jnp.float32).reshape(-1)             # (1,)

    kern = functools.partial(_outblock_kernel, H=H, W=W, Cin=Cin, Cmid=Cmid)

    out_flat = pl.pallas_call(
        kern,
        out_shape=jax.ShapeDtypeStruct((B, 1, HW), x_nchw.dtype),
        grid_spec=pltpu.PrefetchScalarGridSpec(
            num_scalar_prefetch=0,
            grid=(B,),
            in_specs=[
                pl.BlockSpec((1, Cin, HW), lambda b: (b, 0, 0)),       # x
                pl.BlockSpec((Cmid * 9, Cin, 1), lambda b: (0, 0, 0)), # w1
                pl.BlockSpec(memory_space=pltpu.MemorySpace.SMEM),     # b1
                pl.BlockSpec(memory_space=pltpu.MemorySpace.SMEM),     # w2
                pl.BlockSpec(memory_space=pltpu.MemorySpace.SMEM),     # b2
            ],
            out_specs=pl.BlockSpec((1, 1, HW), lambda b: (b, 0, 0)),
        ),
        compiler_params=pltpu.CompilerParams(
            dimension_semantics=("parallel",)),
    )(x_flat, w1_cols, b1k, w2k, b2k)

    return out_flat.reshape(B, 1, H, W)                  # free reshape


def _reference_forward(x_nchw, w1, b1, w2, b2):
    """Pure-JAX NCHW reference (matches PyTorch Conv2d semantics)."""
    dn = jax.lax.conv_dimension_numbers(x_nchw.shape, w1.shape,
                                        ("NCHW", "OIHW", "NCHW"))
    y = jax.lax.conv_general_dilated(x_nchw, w1, (1, 1), "SAME",
                                     dimension_numbers=dn)
    y = jax.nn.relu(y + b1.reshape(1, -1, 1, 1))
    dn2 = jax.lax.conv_dimension_numbers(y.shape, w2.shape,
                                         ("NCHW", "OIHW", "NCHW"))
    z = jax.lax.conv_general_dilated(y, w2, (1, 1), "SAME",
                                     dimension_numbers=dn2)
    return jax.nn.relu(z + b2.reshape(1, -1, 1, 1))


if __name__ == "__main__":
    B, Cin, H, W = 2, 4, 16, 16
    Cmid = Cin // 2

    key = jax.random.PRNGKey(0)
    kx, kw1, kb1, kw2, kb2 = jax.random.split(key, 5)

    x = jax.random.normal(kx, (B, Cin, H, W), dtype=jnp.float32)
    # Deterministic synthetic parameters (Conv2d shapes from __init__).
    w1 = jax.random.normal(kw1, (Cmid, Cin, 3, 3), dtype=jnp.float32) * 0.2
    b1 = jax.random.normal(kb1, (Cmid,), dtype=jnp.float32) * 0.1
    w2 = jax.random.normal(kw2, (1, Cmid, 1, 1), dtype=jnp.float32) * 0.2
    b2 = jax.random.normal(kb2, (1,), dtype=jnp.float32) * 0.1

    out = jax.block_until_ready(outblock_forward(x, w1, b1, w2, b2))

    ref = jax.block_until_ready(_reference_forward(x, w1, b1, w2, b2))
    assert out.shape == (B, 1, H, W), out.shape
    np.testing.assert_allclose(np.asarray(out), np.asarray(ref),
                               rtol=1e-5, atol=1e-5)

    print("KERNEL_OK")
</pallas_src>

<mosaic_0001>
module attributes {stable_mosaic.version = 11 : i64} {
  func.func @_outblock_kernel(%arg0: i32, %arg1: memref<1x4x256xf32, #tpu.memory_space<vmem>>, %arg2: memref<18x4x1xf32, #tpu.memory_space<vmem>>, %arg3: memref<2xf32, #tpu.memory_space<smem>>, %arg4: memref<2xf32, #tpu.memory_space<smem>>, %arg5: memref<1xf32, #tpu.memory_space<smem>>, %arg6: memref<1x1x256xf32, #tpu.memory_space<vmem>>) attributes {dimension_semantics = [#tpu.dimension_semantics<parallel>], iteration_bounds = array<i64: 2>, scalar_prefetch = 0 : i64, scratch_operands = 0 : i64, tpu.core_type = #tpu.core_type<tc>, window_params = [{transform_indices = @transform_0, window_bounds = array<i64: 1, 4, 256>}, {pipeline_mode = #tpu.pipeline_mode<synchronous>, transform_indices = @transform_1, window_bounds = array<i64: 18, 4, 1>}, {transform_indices = @transform_2, window_bounds = array<i64: 2>}, {transform_indices = @transform_3, window_bounds = array<i64: 2>}, {transform_indices = @transform_4, window_bounds = array<i64: 1>}, {transform_indices = @transform_5, window_bounds = array<i64: 1, 1, 256>}]} {
    %c0 = arith.constant 0 : index
    %c0_0 = arith.constant 0 : index
    %c0_1 = arith.constant 0 : index
    %0 = vector.load %arg1[%c0, %c0_0, %c0_1] : memref<1x4x256xf32, #tpu.memory_space<vmem>>, vector<1x4x256xf32>
    %1 = vector.shape_cast %0 : vector<1x4x256xf32> to vector<4x256xf32>
    %2 = tpu.iota {dimensions = array<i32: 1>} : vector<1x256xi32>
    %c15_i32 = arith.constant 15 : i32
    %3 = vector.broadcast %c15_i32 : i32 to vector<1x256xi32>
    %4 = arith.andi %2, %3 : vector<1x256xi32>
    %c4_i32 = arith.constant 4 : i32
    %5 = vector.broadcast %c4_i32 : i32 to vector<1x256xi32>
    %6 = arith.shrsi %2, %5 : vector<1x256xi32>
    %c1_i32 = arith.constant 1 : i32
    %7 = vector.broadcast %c1_i32 : i32 to vector<1x256xi32>
    %8 = arith.cmpi sge, %4, %7 : vector<1x256xi32>
    %c14_i32 = arith.constant 14 : i32
    %9 = vector.broadcast %c14_i32 : i32 to vector<1x256xi32>
    %10 = arith.cmpi sle, %4, %9 : vector<1x256xi32>
    %c1_i32_2 = arith.constant 1 : i32
    %11 = vector.broadcast %c1_i32_2 : i32 to vector<1x256xi32>
    %12 = arith.cmpi sge, %6, %11 : vector<1x256xi32>
    %c14_i32_3 = arith.constant 14 : i32
    %13 = vector.broadcast %c14_i32_3 : i32 to vector<1x256xi32>
    %14 = arith.cmpi sle, %6, %13 : vector<1x256xi32>
    %c1_i32_4 = arith.constant 1 : i32
    %15 = tpu.dynamic_rotate %1 by %c1_i32_4 dim 1 : vector<4x256xf32>, i32 -> vector<4x256xf32>
    %cst = arith.constant 0.000000e+00 : f32
    %16 = vector.shape_cast %8 : vector<1x256xi1> to vector<1x256xi1>
    %17 = vector.broadcast %16 : vector<1x256xi1> to vector<4x256xi1>
    %18 = vector.broadcast %cst : f32 to vector<4x256xf32>
    %19 = arith.select %17, %15, %18 : vector<4x256xi1>, vector<4x256xf32>
    %c255_i32 = arith.constant 255 : i32
    %20 = tpu.dynamic_rotate %1 by %c255_i32 dim 1 : vector<4x256xf32>, i32 -> vector<4x256xf32>
    %cst_5 = arith.constant 0.000000e+00 : f32
    %21 = vector.shape_cast %10 : vector<1x256xi1> to vector<1x256xi1>
    %22 = vector.broadcast %21 : vector<1x256xi1> to vector<4x256xi1>
    %23 = vector.broadcast %cst_5 : f32 to vector<4x256xf32>
    %24 = arith.select %22, %20, %23 : vector<4x256xi1>, vector<4x256xf32>
    %c16_i32 = arith.constant 16 : i32
    %25 = tpu.dynamic_rotate %19 by %c16_i32 dim 1 : vector<4x256xf32>, i32 -> vector<4x256xf32>
    %cst_6 = arith.constant 0.000000e+00 : f32
    %26 = vector.shape_cast %12 : vector<1x256xi1> to vector<1x256xi1>
    %27 = vector.broadcast %26 : vector<1x256xi1> to vector<4x256xi1>
    %28 = vector.broadcast %cst_6 : f32 to vector<4x256xf32>
    %29 = arith.select %27, %25, %28 : vector<4x256xi1>, vector<4x256xf32>
    %c0_7 = arith.constant 0 : index
    %c0_8 = arith.constant 0 : index
    %c0_9 = arith.constant 0 : index
    %30 = vector.load %arg2[%c0_7, %c0_8, %c0_9] : memref<18x4x1xf32, #tpu.memory_space<vmem>>, vector<1x4x1xf32>
    %31 = vector.shape_cast %30 : vector<1x4x1xf32> to vector<4x1xf32>
    %32 = vector.broadcast %31 : vector<4x1xf32> to vector<4x256xf32>
    %33 = arith.mulf %32, %29 : vector<4x256xf32>
    %c9 = arith.constant 9 : index
    %c0_10 = arith.constant 0 : index
    %c0_11 = arith.constant 0 : index
    %34 = vector.load %arg2[%c9, %c0_10, %c0_11] : memref<18x4x1xf32, #tpu.memory_space<vmem>>, vector<1x4x1xf32>
    %35 = vector.shape_cast %34 : vector<1x4x1xf32> to vector<4x1xf32>
    %36 = vector.broadcast %35 : vector<4x1xf32> to vector<4x256xf32>
    %37 = arith.mulf %36, %29 : vector<4x256xf32>
    %c16_i32_12 = arith.constant 16 : i32
    %38 = tpu.dynamic_rotate %1 by %c16_i32_12 dim 1 : vector<4x256xf32>, i32 -> vector<4x256xf32>
    %cst_13 = arith.constant 0.000000e+00 : f32
    %39 = vector.shape_cast %12 : vector<1x256xi1> to vector<1x256xi1>
    %40 = vector.broadcast %39 : vector<1x256xi1> to vector<4x256xi1>
    %41 = vector.broadcast %cst_13 : f32 to vector<4x256xf32>
    %42 = arith.select %40, %38, %41 : vector<4x256xi1>, vector<4x256xf32>
    %c1 = arith.constant 1 : index
    %c0_14 = arith.constant 0 : index
    %c0_15 = arith.constant 0 : index
    %43 = vector.load %arg2[%c1, %c0_14, %c0_15] : memref<18x4x1xf32, #tpu.memory_space<vmem>>, vector<1x4x1xf32>
    %44 = vector.shape_cast %43 : vector<1x4x1xf32> to vector<4x1xf32>
    %45 = vector.broadcast %44 : vector<4x1xf32> to vector<4x256xf32>
    %46 = arith.mulf %45, %42 : vector<4x256xf32>
    %47 = arith.addf %33, %46 : vector<4x256xf32>
    %c10 = arith.constant 10 : index
    %c0_16 = arith.constant 0 : index
    %c0_17 = arith.constant 0 : index
    %48 = vector.load %arg2[%c10, %c0_16, %c0_17] : memref<18x4x1xf32, #tpu.memory_space<vmem>>, vector<1x4x1xf32>
    %49 = vector.shape_cast %48 : vector<1x4x1xf32> to vector<4x1xf32>
    %50 = vector.broadcast %49 : vector<4x1xf32> to vector<4x256xf32>
    %51 = arith.mulf %50, %42 : vector<4x256xf32>
    %52 = arith.addf %37, %51 : vector<4x256xf32>
    %c16_i32_18 = arith.constant 16 : i32
    %53 = tpu.dynamic_rotate %24 by %c16_i32_18 dim 1 : vector<4x256xf32>, i32 -> vector<4x256xf32>
    %cst_19 = arith.constant 0.000000e+00 : f32
    %54 = vector.shape_cast %12 : vector<1x256xi1> to vector<1x256xi1>
    %55 = vector.broadcast %54 : vector<1x256xi1> to vector<4x256xi1>
    %56 = vector.broadcast %cst_19 : f32 to vector<4x256xf32>
    %57 = arith.select %55, %53, %56 : vector<4x256xi1>, vector<4x256xf32>
    %c2 = arith.constant 2 : index
    %c0_20 = arith.constant 0 : index
    %c0_21 = arith.constant 0 : index
    %58 = vector.load %arg2[%c2, %c0_20, %c0_21] : memref<18x4x1xf32, #tpu.memory_space<vmem>>, vector<1x4x1xf32>
    %59 = vector.shape_cast %58 : vector<1x4x1xf32> to vector<4x1xf32>
    %60 = vector.broadcast %59 : vector<4x1xf32> to vector<4x256xf32>
    %61 = arith.mulf %60, %57 : vector<4x256xf32>
    %62 = arith.addf %47, %61 : vector<4x256xf32>
    %c11 = arith.constant 11 : index
    %c0_22 = arith.constant 0 : index
    %c0_23 = arith.constant 0 : index
    %63 = vector.load %arg2[%c11, %c0_22, %c0_23] : memref<18x4x1xf32, #tpu.memory_space<vmem>>, vector<1x4x1xf32>
    %64 = vector.shape_cast %63 : vector<1x4x1xf32> to vector<4x1xf32>
    %65 = vector.broadcast %64 : vector<4x1xf32> to vector<4x256xf32>
    %66 = arith.mulf %65, %57 : vector<4x256xf32>
    %67 = arith.addf %52, %66 : vector<4x256xf32>
    %c3 = arith.constant 3 : index
    %c0_24 = arith.constant 0 : index
    %c0_25 = arith.constant 0 : index
    %68 = vector.load %arg2[%c3, %c0_24, %c0_25] : memref<18x4x1xf32, #tpu.memory_space<vmem>>, vector<1x4x1xf32>
    %69 = vector.shape_cast %68 : vector<1x4x1xf32> to vector<4x1xf32>
    %70 = vector.broadcast %69 : vector<4x1xf32> to vector<4x256xf32>
    %71 = arith.mulf %70, %19 : vector<4x256xf32>
    %72 = arith.addf %62, %71 : vector<4x256xf32>
    %c12 = arith.constant 12 : index
    %c0_26 = arith.constant 0 : index
    %c0_27 = arith.constant 0 : index
    %73 = vector.load %arg2[%c12, %c0_26, %c0_27] : memref<18x4x1xf32, #tpu.memory_space<vmem>>, vector<1x4x1xf32>
    %74 = vector.shape_cast %73 : vector<1x4x1xf32> to vector<4x1xf32>
    %75 = vector.broadcast %74 : vector<4x1xf32> to vector<4x256xf32>
    %76 = arith.mulf %75, %19 : vector<4x256xf32>
    %77 = arith.addf %67, %76 : vector<4x256xf32>
    %c4 = arith.constant 4 : index
    %c0_28 = arith.constant 0 : index
    %c0_29 = arith.constant 0 : index
    %78 = vector.load %arg2[%c4, %c0_28, %c0_29] : memref<18x4x1xf32, #tpu.memory_space<vmem>>, vector<1x4x1xf32>
    %79 = vector.shape_cast %78 : vector<1x4x1xf32> to vector<4x1xf32>
    %80 = vector.broadcast %79 : vector<4x1xf32> to vector<4x256xf32>
    %81 = arith.mulf %80, %1 : vector<4x256xf32>
    %82 = arith.addf %72, %81 : vector<4x256xf32>
    %c13 = arith.constant 13 : index
    %c0_30 = arith.constant 0 : index
    %c0_31 = arith.constant 0 : index
    %83 = vector.load %arg2[%c13, %c0_30, %c0_31] : memref<18x4x1xf32, #tpu.memory_space<vmem>>, vector<1x4x1xf32>
    %84 = vector.shape_cast %83 : vector<1x4x1xf32> to vector<4x1xf32>
    %85 = vector.broadcast %84 : vector<4x1xf32> to vector<4x256xf32>
    %86 = arith.mulf %85, %1 : vector<4x256xf32>
    %87 = arith.addf %77, %86 : vector<4x256xf32>
    %c5 = arith.constant 5 : index
    %c0_32 = arith.constant 0 : index
    %c0_33 = arith.constant 0 : index
    %88 = vector.load %arg2[%c5, %c0_32, %c0_33] : memref<18x4x1xf32, #tpu.memory_space<vmem>>, vector<1x4x1xf32>
    %89 = vector.shape_cast %88 : vector<1x4x1xf32> to vector<4x1xf32>
    %90 = vector.broadcast %89 : vector<4x1xf32> to vector<4x256xf32>
    %91 = arith.mulf %90, %24 : vector<4x256xf32>
    %92 = arith.addf %82, %91 : vector<4x256xf32>
    %c14 = arith.constant 14 : index
    %c0_34 = arith.constant 0 : index
    %c0_35 = arith.constant 0 : index
    %93 = vector.load %arg2[%c14, %c0_34, %c0_35] : memref<18x4x1xf32, #tpu.memory_space<vmem>>, vector<1x4x1xf32>
    %94 = vector.shape_cast %93 : vector<1x4x1xf32> to vector<4x1xf32>
    %95 = vector.broadcast %94 : vector<4x1xf32> to vector<4x256xf32>
    %96 = arith.mulf %95, %24 : vector<4x256xf32>
    %97 = arith.addf %87, %96 : vector<4x256xf32>
    %c240_i32 = arith.constant 240 : i32
    %98 = tpu.dynamic_rotate %19 by %c240_i32 dim 1 : vector<4x256xf32>, i32 -> vector<4x256xf32>
    %cst_36 = arith.constant 0.000000e+00 : f32
    %99 = vector.shape_cast %14 : vector<1x256xi1> to vector<1x256xi1>
    %100 = vector.broadcast %99 : vector<1x256xi1> to vector<4x256xi1>
    %101 = vector.broadcast %cst_36 : f32 to vector<4x256xf32>
    %102 = arith.select %100, %98, %101 : vector<4x256xi1>, vector<4x256xf32>
    %c6 = arith.constant 6 : index
    %c0_37 = arith.constant 0 : index
    %c0_38 = arith.constant 0 : index
    %103 = vector.load %arg2[%c6, %c0_37, %c0_38] : memref<18x4x1xf32, #tpu.memory_space<vmem>>, vector<1x4x1xf32>
    %104 = vector.shape_cast %103 : vector<1x4x1xf32> to vector<4x1xf32>
    %105 = vector.broadcast %104 : vector<4x1xf32> to vector<4x256xf32>
    %106 = arith.mulf %105, %102 : vector<4x256xf32>
    %107 = arith.addf %92, %106 : vector<4x256xf32>
    %c15 = arith.constant 15 : index
    %c0_39 = arith.constant 0 : index
    %c0_40 = arith.constant 0 : index
    %108 = vector.load %arg2[%c15, %c0_39, %c0_40] : memref<18x4x1xf32, #tpu.memory_space<vmem>>, vector<1x4x1xf32>
    %109 = vector.shape_cast %108 : vector<1x4x1xf32> to vector<4x1xf32>
    %110 = vector.broadcast %109 : vector<4x1xf32> to vector<4x256xf32>
    %111 = arith.mulf %110, %102 : vector<4x256xf32>
    %112 = arith.addf %97, %111 : vector<4x256xf32>
    %c240_i32_41 = arith.constant 240 : i32
    %113 = tpu.dynamic_rotate %1 by %c240_i32_41 dim 1 : vector<4x256xf32>, i32 -> vector<4x256xf32>
    %cst_42 = arith.constant 0.000000e+00 : f32
    %114 = vector.shape_cast %14 : vector<1x256xi1> to vector<1x256xi1>
    %115 = vector.broadcast %114 : vector<1x256xi1> to vector<4x256xi1>
    %116 = vector.broadcast %cst_42 : f32 to vector<4x256xf32>
    %117 = arith.select %115, %113, %116 : vector<4x256xi1>, vector<4x256xf32>
    %c7 = arith.constant 7 : index
    %c0_43 = arith.constant 0 : index
    %c0_44 = arith.constant 0 : index
    %118 = vector.load %arg2[%c7, %c0_43, %c0_44] : memref<18x4x1xf32, #tpu.memory_space<vmem>>, vector<1x4x1xf32>
    %119 = vector.shape_cast %118 : vector<1x4x1xf32> to vector<4x1xf32>
    %120 = vector.broadcast %119 : vector<4x1xf32> to vector<4x256xf32>
    %121 = arith.mulf %120, %117 : vector<4x256xf32>
    %122 = arith.addf %107, %121 : vector<4x256xf32>
    %c16 = arith.constant 16 : index
    %c0_45 = arith.constant 0 : index
    %c0_46 = arith.constant 0 : index
    %123 = vector.load %arg2[%c16, %c0_45, %c0_46] : memref<18x4x1xf32, #tpu.memory_space<vmem>>, vector<1x4x1xf32>
    %124 = vector.shape_cast %123 : vector<1x4x1xf32> to vector<4x1xf32>
    %125 = vector.broadcast %124 : vector<4x1xf32> to vector<4x256xf32>
    %126 = arith.mulf %125, %117 : vector<4x256xf32>
    %127 = arith.addf %112, %126 : vector<4x256xf32>
    %c240_i32_47 = arith.constant 240 : i32
    %128 = tpu.dynamic_rotate %24 by %c240_i32_47 dim 1 : vector<4x256xf32>, i32 -> vector<4x256xf32>
    %cst_48 = arith.constant 0.000000e+00 : f32
    %129 = vector.shape_cast %14 : vector<1x256xi1> to vector<1x256xi1>
    %130 = vector.broadcast %129 : vector<1x256xi1> to vector<4x256xi1>
    %131 = vector.broadcast %cst_48 : f32 to vector<4x256xf32>
    %132 = arith.select %130, %128, %131 : vector<4x256xi1>, vector<4x256xf32>
    %c8 = arith.constant 8 : index
    %c0_49 = arith.constant 0 : index
    %c0_50 = arith.constant 0 : index
    %133 = vector.load %arg2[%c8, %c0_49, %c0_50] : memref<18x4x1xf32, #tpu.memory_space<vmem>>, vector<1x4x1xf32>
    %134 = vector.shape_cast %133 : vector<1x4x1xf32> to vector<4x1xf32>
    %135 = vector.broadcast %134 : vector<4x1xf32> to vector<4x256xf32>
    %136 = arith.mulf %135, %132 : vector<4x256xf32>
    %137 = arith.addf %122, %136 : vector<4x256xf32>
    %c17 = arith.constant 17 : index
    %c0_51 = arith.constant 0 : index
    %c0_52 = arith.constant 0 : index
    %138 = vector.load %arg2[%c17, %c0_51, %c0_52] : memref<18x4x1xf32, #tpu.memory_space<vmem>>, vector<1x4x1xf32>
    %139 = vector.shape_cast %138 : vector<1x4x1xf32> to vector<4x1xf32>
    %140 = vector.broadcast %139 : vector<4x1xf32> to vector<4x256xf32>
    %141 = arith.mulf %140, %132 : vector<4x256xf32>
    %142 = arith.addf %127, %141 : vector<4x256xf32>
    %cst_53 = arith.constant dense<0.000000e+00> : vector<256xf32>
    %143 = vector.multi_reduction <add>, %137, %cst_53 [0] : vector<4x256xf32> to vector<256xf32>
    %144 = vector.shape_cast %143 : vector<256xf32> to vector<1x256xf32>
    %c0_54 = arith.constant 0 : index
    %145 = memref.load %arg3[%c0_54] : memref<2xf32, #tpu.memory_space<smem>>
    %146 = vector.broadcast %145 : f32 to vector<1x256xf32>
    %147 = arith.addf %144, %146 : vector<1x256xf32>
    %cst_55 = arith.constant 0.000000e+00 : f32
    %148 = vector.broadcast %cst_55 : f32 to vector<1x256xf32>
    %149 = arith.maximumf %147, %148 : vector<1x256xf32>
    %c0_56 = arith.constant 0 : index
    %150 = memref.load %arg4[%c0_56] : memref<2xf32, #tpu.memory_space<smem>>
    %151 = vector.broadcast %150 : f32 to vector<1x256xf32>
    %152 = arith.mulf %151, %149 : vector<1x256xf32>
    %cst_57 = arith.constant dense<0.000000e+00> : vector<256xf32>
    %153 = vector.multi_reduction <add>, %142, %cst_57 [0] : vector<4x256xf32> to vector<256xf32>
    %154 = vector.shape_cast %153 : vector<256xf32> to vector<1x256xf32>
    %c1_58 = arith.constant 1 : index
    %155 = memref.load %arg3[%c1_58] : memref<2xf32, #tpu.memory_space<smem>>
    %156 = vector.broadcast %155 : f32 to vector<1x256xf32>
    %157 = arith.addf %154, %156 : vector<1x256xf32>
    %cst_59 = arith.constant 0.000000e+00 : f32
    %158 = vector.broadcast %cst_59 : f32 to vector<1x256xf32>
    %159 = arith.maximumf %157, %158 : vector<1x256xf32>
    %c1_60 = arith.constant 1 : index
    %160 = memref.load %arg4[%c1_60] : memref<2xf32, #tpu.memory_space<smem>>
    %161 = vector.broadcast %160 : f32 to vector<1x256xf32>
    %162 = arith.mulf %161, %159 : vector<1x256xf32>
    %163 = arith.addf %152, %162 : vector<1x256xf32>
    %c0_61 = arith.constant 0 : index
    %164 = memref.load %arg5[%c0_61] : memref<1xf32, #tpu.memory_space<smem>>
    %165 = vector.broadcast %164 : f32 to vector<1x256xf32>
    %166 = arith.addf %163, %165 : vector<1x256xf32>
    %cst_62 = arith.constant 0.000000e+00 : f32
    %167 = vector.broadcast %cst_62 : f32 to vector<1x256xf32>
    %168 = arith.maximumf %166, %167 : vector<1x256xf32>
    %c0_63 = arith.constant 0 : index
    %c0_64 = arith.constant 0 : index
    %c0_65 = arith.constant 0 : index
    %169 = vector.load %arg6[%c0_63, %c0_64, %c0_65] : memref<1x1x256xf32, #tpu.memory_space<vmem>>, vector<1x1x256xf32>
    %170 = vector.shape_cast %169 : vector<1x1x256xf32> to vector<1x256xf32>
    %171 = vector.shape_cast %168 : vector<1x256xf32> to vector<1x1x256xf32>
    tpu.vector_store %arg6[%c0_63, %c0_64, %c0_65], %171 {strides = array<i32>} : memref<1x1x256xf32, #tpu.memory_space<vmem>>, vector<1x1x256xf32>,
    return
  }
  func.func @transform_0(%arg0: i32) -> (i32, i32, i32) {
    %c0_i32 = arith.constant 0 : i32
    %c0_i32_0 = arith.constant 0 : i32
    %c0_i32_1 = arith.constant 0 : i32
    return %arg0, %c0_i32, %c0_i32_0 : i32, i32, i32
  }
  func.func @transform_1(%arg0: i32) -> (i32, i32, i32) {
    %c0_i32 = arith.constant 0 : i32
    %c0_i32_0 = arith.constant 0 : i32
    %c0_i32_1 = arith.constant 0 : i32
    %c0_i32_2 = arith.constant 0 : i32
    return %c0_i32, %c0_i32_0, %c0_i32_1 : i32, i32, i32
  }
  func.func @transform_2(%arg0: i32) -> i32 {
    %c0_i32 = arith.constant 0 : i32
    %c0_i32_0 = arith.constant 0 : i32
    return %c0_i32 : i32
  }
  func.func @transform_3(%arg0: i32) -> i32 {
    %c0_i32 = arith.constant 0 : i32
    %c0_i32_0 = arith.constant 0 : i32
    return %c0_i32 : i32
  }
  func.func @transform_4(%arg0: i32) -> i32 {
    %c0_i32 = arith.constant 0 : i32
    %c0_i32_0 = arith.constant 0 : i32
    return %c0_i32 : i32
  }
  func.func @transform_5(%arg0: i32) -> (i32, i32, i32) {
    %c0_i32 = arith.constant 0 : i32
    %c0_i32_0 = arith.constant 0 : i32
    %c0_i32_1 = arith.constant 0 : i32
    return %arg0, %c0_i32, %c0_i32_0 : i32, i32, i32
  }
}

</mosaic_0001>

<bundles_post_ra>
// kernel: tpu_custom_call.1
= control target key start
LH: loop header
LB: loop body
LE: loop exit
PB: predicated region body
PF: predicated region fallthrough
CT: control target
= control target key end

     0   :  { %s1329_s0 = inlined_call_operand.vmem [shape: f32[2,4,256], index: 0, kind: input, shape index: {}]   ;;  %s1330_s1 = inlined_call_operand.vmem [shape: f32[18,4,1], index: 1, kind: input, shape index: {}]   ;;  %s1331_s2 = inlined_call_operand.vmem [shape: f32[2], index: 2, kind: input, shape index: {}]   ;;  %s1332_s3 = inlined_call_operand.vmem [shape: f32[2], index: 3, kind: input, shape index: {}]   ;;  %s1333_s4 = inlined_call_operand.<no memory space> [shape: f32[1], index: 4, kind: input, shape index: {}]   ;;  %s1334_s5 = inlined_call_operand.hbm [shape: f32[2,1,256], index: 5, kind: output, shape index: {}]  }
   0x1   :  { %10 = sst [smem:[#allocation2]] %s1333_s4 }
   0x2   :  { %11 = vsyncpa [#allocation5], 0 }
   0x3   :  { %12 = vsyncpa [#allocation7], 0 }
   0x4   :  { %13 = vsyncpa [#allocation4], 0 }
   0x5   :  { %15 = vsyncpa [#allocation4 + $0x1], 0  ;;  %s973_s20 = smov 0   ;;  %s975_s21 = smov 0  }
   0x6   :  { %s977_s22 = smov 0   ;;  %s979_s23 = smov 0  }
   0x7 LB: > { %s994_s4 = sadd.s32 4294967295, %s929_s23   ;;  %s723_s24 = sadd.s32 4294967294, %s929_s23   ;;  %s929_s23 = sphi %s979_s23, %s1360_s23   ;;  %s925_s22 = sphi %s977_s22, %s1359_s22   ;;  %s921_s21 = sphi %s975_s21, %s1358_s21   ;;  %s917_s20 = sphi %s973_s20, %s1357_s20  }
   0x8   : > { %s998_s25 = sadd.s32 1, %s929_s23   ;;  %s138_s26 = sadd.s32 1, %s925_s22 }
   0x9   : > { %s135_s27 = ssub.s32 %s929_s23, %s998_s25  ;;  %p148_p0 = scmp.ne.s32.totalorder %s925_s22, %s921_s21 }
   0xa   : > { %p136_p1 = scmp.eq.s32.totalorder %s135_s27, 0  ;;  %p149_p2 = scmp.eq.s32.totalorder %s994_s4, 1 }
   0xb   : > { %p154_p3 = scmp.ne.s32.totalorder %s921_s21, %s917_s20  ;;  %p155_p4 = scmp.eq.s32.totalorder %s723_s24, 1 }
   0xc   : > { %s1009_s28 = scalar_select %p136_p1, %s925_s22, %s138_s26  }
   0xd   : > { %p1011_p5 = por %p149_p2, %p148_p0  ;;  %p1015_p6 = por %p155_p4, %p154_p3 }
   0xe   : > { %p724_p7 = scmp.ge.s32.totalorder %s929_s23, 1  ;;  %p162_p8 = scmp.lt.s32.totalorder %s929_s23, 3 }
   0xf   : > { %s1338_s29 = scalar_select %p1011_p5, 1, 0 }
  0x10   : > { %s1339_s30 = scalar_select %p1015_p6, 1, 0 }
  0x11   : > { %p1335_p9 = scmp.eq.s32.totalorder %s994_s4, 0  ;;  %p1022_p10 = pnand %p724_p7, %p162_p8 }
  0x12   : > { %s178_s9 = sshll.u32 %s1331_s2, 4  ;;  %s189_s12 = sshll.u32 %s1332_s3, 4  ;;  %s179_s9 = int_to_ptr.vmem [resolvable:$true] %s178_s9  ;;  %s190_s12 = int_to_ptr.vmem [resolvable:$true] %s189_s12 }
  0x13   : > { %s1340_s6 = scalar_select %p1022_p10, 1, 0 }
  0x14   : > { %p770_p11 = pneg %p1022_p10  ;;  %s829_s14 = scalar_lea.vmem %s179_s9, 16 }
  0x15   : > { %p830_p13 = scmp.ne.s32.totalorder %s179_s9, %s829_s14  ;;  %p837_p3 = scmp.lt.s32.totalorder %s179_s9, %s179_s9 }
  0x16   : > { %p1036_p12 = pnand %p1335_p9, %p770_p11  ;;  %p838_p4 = scmp.lt.s32.totalorder %s829_s14, %s829_s14 }
  0x18   : > { %p831_p0 = pneg %p1036_p12  ;;  %p839_p7 = por %p838_p4, %p837_p3 }
  0x1a   : > { %p832_p1 = pnand %p831_p0, %p830_p13 }
  0x1c   : > { %p833_p2 = pneg %p832_p1 }
  0x1e   : > { %p840_p8 = pnand %p839_p7, %p833_p2 }
  0x20   : > { %843 = shalt.err (!%p840_p8)
}
  0x21   : > { %s931_s15 = smov [#allocation3]   ;;  %s844_s16 = scalar_lea.vmem %s190_s12, 16 }
  0x22   : > { %773 = dma.vmem_to_smem (!%p1036_p12), %s179_s9, 16, %s931_s15, [#allocation5]  }
  0x23   : > { %p845_p11 = scmp.ne.s32.totalorder %s190_s12, %s844_s16  ;;  %p852_p5 = scmp.lt.s32.totalorder %s190_s12, %s190_s12 }
  0x24   : > { %p853_p10 = scmp.lt.s32.totalorder %s844_s16, %s844_s16 }
  0x25   : > { %p847_p9 = pnand %p845_p11, %p831_p0 }
  0x26   : > { %p854_p13 = por %p853_p10, %p852_p5 }
  0x27   : > { %p848_p6 = pneg %p847_p9 }
  0x29   : > { %p855_p1 = pnand %p854_p13, %p848_p6 }
  0x2b   : > { %858 = shalt.err (!%p855_p1)
}
  0x2c   : > { %s932_s17 = smov [#allocation6]   ;;  %p1342_p2 = scmp.ne.s32.totalorder %s1340_s6, 0 }
  0x2d   : > { %776 = dma.vmem_to_smem (!%p1036_p12), %s190_s12, 16, %s932_s17, [#allocation7]  }
  0x2e   : > { %213 = sbr.rel (%p1342_p2) target bundleno = 372 (0x174), region = 40  ;;  %p1343_p3 = scmp.eq.s32.totalorder (!%p1342_p2), %s994_s4, 0 }
  0x35   : > { %904 = dma.done.wait (%p1343_p3), [#allocation5], 16   ;;  %p1344_p4 = pmov %p1343_p3 }
  0x36   : > { %p1345_p9 = pmov %p1343_p3 }
  0x37   : > { %906 = vsyncadd (%p1344_p4), [#allocation5], 4294967280 }
  0x38   : > { %908 = dma.done.wait (%p1345_p9), [#allocation7], 16   ;;  %p1346_p5 = pmov %p1343_p3 }
  0x3a   : > { %910 = vsyncadd (%p1346_p5), [#allocation7], 4294967280 }
  0x3b   : > { %223 = sfence }
  0x3c   : > { %p246_p6 = scmp.lt.s32.totalorder %s994_s4, 1  ;;  %v933_v0 = vmov 0   ;;  %s934_s6 = smov 127   ;;  %v734_v3 = vld [vmem:[%s1330_s1 + $0x24] sm:$0xf]  ;;  %v252_v21 = vlaneseq  ;;  %vm547_vm12 = vcmask 1043456  }
  0x3d   : > { %827 = vset.pattern.permute.xlu1 %v933_v0  ;;  %826 = vset.pattern.permute.xlu0 %v933_v0  ;;  %s935_s7 = smov 1   ;;  %v309_v4 = vld [vmem:[%s1330_s1] sm:$0xf]  ;;  %v735_v5 = vld [vmem:[%s1330_s1 + $0x4] sm:$0xf]  ;;  %s937_s12 = smov 112  }
  0x3e   : > { %s247_s18 = scalar_select %p246_p6, %s994_s4, 1  ;;  %v736_v6 = vld [vmem:[%s1330_s1 + $0x28] sm:$0xf]  ;;  %v738_v8 = vld [vmem:[%s1330_s1 + $0x2c] sm:$0xf]  ;;  %v1130_v22 = vand.u32 127, %v252_v21 }
  0x3f   : > { %v737_v7 = vld [vmem:[%s1330_s1 + $0x8] sm:$0xf]  ;;  %v739_v9 = vld [vmem:[%s1330_s1 + $0xc] sm:$0xf]  ;;  %v740_v10 = vld [vmem:[%s1330_s1 + $0x30] sm:$0xf] }
  0x40   : > { %s758_s19 = sshll.u32 %s247_s18, 3  ;;  %v741_v11 = vld [vmem:[%s1330_s1 + $0x10] sm:$0xf]  ;;  %v742_v12 = vld [vmem:[%s1330_s1 + $0x34] sm:$0xf]  ;;  %v1133_v23 = vadd.s32 128, %v1130_v22 }
  0x41   : > { %s250_s27 = scalar_lea.vmem %s1329_s0, %s758_s19  ;;  %v743_v13 = vld [vmem:[%s1330_s1 + $0x14] sm:$0xf]  ;;  %v744_v14 = vld [vmem:[%s1330_s1 + $0x38] sm:$0xf]  ;;  %v746_v16 = vld [vmem:[%s1330_s1 + $0x3c] sm:$0xf] }
  0x42   : > { %v1061_v1 = vld [vmem:[%s250_s27] sm:$0xff]  ;;  %v745_v15 = vld [vmem:[%s1330_s1 + $0x18] sm:$0xf]  ;;  %v747_v17 = vld [vmem:[%s1330_s1 + $0x1c] sm:$0xf]  ;;  %v255_v24 = vand.u32 15, %v1130_v22 }
  0x43   : > { %283 = vrot.lane.b32.xlu1 %v1061_v1, %s934_s6  ;;  %270 = vrot.lane.b32.xlu0 %v1061_v1, %s935_s7  ;;  %v1067_v2 = vcombine.high %v1061_v1, %v1061_v1  ;;  %v748_v18 = vld [vmem:[%s1330_s1 + $0x40] sm:$0xf]  ;;  %v750_v20 = vld [vmem:[%s1330_s1 + $0x44] sm:$0xf]  ;;  %v256_v25 = vand.u32 15, %v1133_v23  ;;  %vm274_vm0 = vcmp.lt.s32.totalorder %v1130_v22, 1 }
  0x44   : > { %v749_v19 = vld [vmem:[%s1330_s1 + $0x20] sm:$0xf]  ;;  %vm259_vm1 = vcmp.ge.s32.totalorder %v255_v24, 1  ;;  %vm287_vm3 = vcmp.lt.s32.totalorder %v1130_v22, 127  ;;  %vm261_vm4 = vcmp.le.s32.totalorder %v255_v24, 14  ;;  %v257_v56 = vshra.s32 %v1130_v22, 4 }
  0x45   : > { %vm260_vm2 = vcmp.ge.s32.totalorder %v256_v25, 1  ;;  %vm262_vm5 = vcmp.le.s32.totalorder %v256_v25, 14  ;;  %v258_v57 = vshra.s32 %v1133_v23, 4  ;;  %vm300_vm6 = vcmp.lt.s32.totalorder %v1130_v22, 16  ;;  %s751_s13 = sld [smem:[#allocation3 + $0x1]]  ;;  %s568_s14 = sld [smem:[#allocation6]] }
  0x46   : > { %vm1182_vm7 = vcmp.ge.s32.totalorder %v257_v56, 1  ;;  %vm456_vm9 = vcmp.lt.s32.totalorder %v1130_v22, 112  ;;  %vm1207_vm10 = vcmp.le.s32.totalorder %v257_v56, 14  ;;  %s1277_s15 = sld [smem:[#allocation6 + $0x1]]  ;;  %s598_s16 = sld [smem:[#allocation2]]  ;;  %vm624_vm13 = vcmp.lt.s32.totalorder %v252_v21, 256 }
  0x47   : > { %285 = vrot.lane.b32.xlu1 %v1067_v2, %s934_s6  ;;  %272 = vrot.lane.b32.xlu0 %v1067_v2, %s935_s7  ;;  %s936_s7 = smov 16   ;;  %vm1186_vm8 = vcmp.ge.s32.totalorder %v258_v57, 1  ;;  %vm1211_vm11 = vcmp.le.s32.totalorder %v258_v57, 14  ;;  %s243_s17 = sand.u32 1, %s921_s21  }
  0x48   : > { %s731_s18 = sshll.u32 %s243_s17, 1  ;;  %s759_s19 = sshll.u32 %s994_s4, 5 }
  0x49   : > { %s245_s24 = scalar_lea.vmem [#allocation8], %s731_s18  ;;  %s1287_s8 = scalar_lea.hbm %s1334_s5, %s759_s19 }
  0x4a   : > { %s642_s26 = sshll.u32 %s245_s24, 4  ;;  %s628_s9 = scalar_lea.sflag [#allocation4], %s243_s17  ;;  %s1289_s26 = int_to_ptr.vmem [resolvable:$true] %s642_s26 }
  0x4b   : > { %321 = vperm.xlu1 %827, %v734_v3   ;;  %312 = vperm.xlu0 %826, %v309_v4   ;;  %s859_s10 = scalar_lea.vmem %s1289_s26, 32  ;;  %p1355_p12 = scmp.ne.s32.totalorder %s1338_s29, 0 }
  0x4c   : > { %p860_p10 = scmp.ne.s32.totalorder %s1289_s26, %s859_s10  ;;  %s939_s4 = smov [#allocation8]  }
  0x4d   : > { %s863_s11 = sshll.u32 %s939_s4, 4  ;;  %s864_s11 = int_to_ptr.vmem [resolvable:$false] %s863_s11 }
  0x4e   : > { %p861_p0 = pnand %p860_p10, %p1355_p12  ;;  %p866_p8 = scmp.lt.s32.totalorder %s1289_s26, %s864_s11 }
  0x4f   : > { %338 = vperm.xlu1 %827, %v735_v5   ;;  %349 = vperm.xlu0 %826, %v736_v6  }
  0x50   : > { %p862_p7 = pneg %p861_p0 }
  0x53   : > { %368 = vperm.xlu1 %827, %v737_v7   ;;  %379 = vperm.xlu0 %826, %v738_v8  }
  0x57   : > { %390 = vperm.xlu1 %827, %v739_v9   ;;  %401 = vperm.xlu0 %826, %v740_v10  }
  0x5b   : > { %326 = vrot.lane.b32.xlu1 %v1061_v1, %s936_s7  ;;  %328 = vrot.lane.b32.xlu0 %v1067_v2, %s936_s7 }
  0x5f   : > { %412 = vperm.xlu1 %827, %v741_v11   ;;  %423 = vperm.xlu0 %826, %v742_v12  }
  0x63   : > { %434 = vperm.xlu1 %827, %v743_v13   ;;  %445 = vperm.xlu0 %826, %v744_v14  }
  0x67   : > { %469 = vperm.xlu1 %827, %v745_v15   ;;  %480 = vperm.xlu0 %826, %v746_v16  }
  0x6b   : > { %499 = vperm.xlu1 %827, %v747_v17   ;;  %510 = vperm.xlu0 %826, %v748_v18  }
  0x6f   : > { %529 = vperm.xlu1 %827, %v749_v19   ;;  %540 = vperm.xlu0 %826, %v750_v20  }
  0xb5   : > { %v284_v26 = vpop.permute.xlu1 %283  ;;  %v271_v27 = vpop.permute.xlu0 %270 }
  0xb9   : > { %v286_v28 = vpop.permute.xlu1 %285  ;;  %v273_v29 = vpop.permute.xlu0 %272 }
  0xba   : > { %v275_v30 = vsel %vm274_vm0, %v271_v27, %v273_v29  ;;  %v276_v31 = vsel %vm274_vm0, %v273_v29, %v271_v27  ;;  %v288_v34 = vsel %vm287_vm3, %v284_v26, %v286_v28  ;;  %v289_v35 = vsel %vm287_vm3, %v286_v28, %v284_v26 }
  0xbb   : > { %v1139_v32 = vsel %vm259_vm1, %v276_v31, 0.0  ;;  %v1141_v33 = vsel %vm260_vm2, %v275_v30, 0.0  ;;  %v1147_v36 = vsel %vm261_vm4, %v288_v34, 0.0  ;;  %v1149_v37 = vsel %vm262_vm5, %v289_v35, 0.0 }
  0xbc   : > { %296 = vrot.lane.b32.xlu1 %v1139_v32, %s936_s7  ;;  %298 = vrot.lane.b32.xlu0 %v1141_v33, %s936_s7 }
  0xc0   : > { %356 = vrot.lane.b32.xlu1 %v1147_v36, %s936_s7  ;;  %358 = vrot.lane.b32.xlu0 %v1149_v37, %s936_s7  ;;  %s562_s7 = sld [smem:[#allocation3]] }
  0xc4   : > { %487 = vrot.lane.b32.xlu1 %v1061_v1, %s937_s12  ;;  %489 = vrot.lane.b32.xlu0 %v1067_v2, %s937_s12 }
  0xc8   : > { %452 = vrot.lane.b32.xlu1 %v1139_v32, %s937_s12  ;;  %454 = vrot.lane.b32.xlu0 %v1141_v33, %s937_s12 }
  0xca   : > { %v322_v38 = vpop.permute.xlu1 %321  ;;  %v313_v39 = vpop.permute.xlu0 %312 }
  0xcc   : > { %517 = vrot.lane.b32.xlu1 %v1147_v36, %s937_s12  ;;  %519 = vrot.lane.b32.xlu0 %v1149_v37, %s937_s12  ;;  %s865_s12 = scalar_lea.vmem %s864_s11, 64 }
  0xcd   : > { %p867_p11 = scmp.lt.s32.totalorder %s865_s12, %s859_s10 }
  0xce   : > { %v339_v40 = vpop.permute.xlu1 %338  ;;  %v350_v41 = vpop.permute.xlu0 %349 }
  0xcf   : > { %p868_p13 = por %p867_p11, %p866_p8 }
  0xd1   : > { %p869_p1 = pnand %p868_p13, %p862_p7 }
  0xd2   : > { %v369_v42 = vpop.permute.xlu1 %368  ;;  %v380_v43 = vpop.permute.xlu0 %379 }
  0xd6   : > { %v391_v44 = vpop.permute.xlu1 %390  ;;  %v402_v45 = vpop.permute.xlu0 %401 }
  0xd7   : > { %v393_v16 = vmul.f32 %v391_v44, %v1139_v32  ;;  %v394_v17 = vmul.f32 %v391_v44, %v1141_v33  ;;  %v404_v24 = vmul.f32 %v402_v45, %v1139_v32  ;;  %v405_v25 = vmul.f32 %v402_v45, %v1141_v33 }
  0xda   : > { %v327_v46 = vpop.permute.xlu1 %326  ;;  %v329_v47 = vpop.permute.xlu0 %328 }
  0xdb   : > { %v330_v62 = vsel %vm300_vm6, %v327_v46, %v329_v47  ;;  %v331_v63 = vsel %vm300_vm6, %v329_v47, %v327_v46 }
  0xdc   : > { %v332_v4 = vsel %vm1182_vm7, %v331_v63, 0.0  ;;  %v333_v5 = vsel %vm1186_vm8, %v330_v62, 0.0 }
  0xdd   : > { %v341_v18 = vmul.f32 %v339_v40, %v332_v4  ;;  %v342_v19 = vmul.f32 %v339_v40, %v333_v5  ;;  %v352_v26 = vmul.f32 %v350_v41, %v332_v4  ;;  %v353_v27 = vmul.f32 %v350_v41, %v333_v5 }
  0xde   : > { %v413_v48 = vpop.permute.xlu1 %412  ;;  %v1161_v49 = vpop.permute.xlu0 %423 }
  0xdf   : > { %v415_v46 = vmul.f32 %v413_v48, %v1061_v1  ;;  %v416_v47 = vmul.f32 %v413_v48, %v1067_v2 }
  0xe2   : > { %v1163_v50 = vpop.permute.xlu1 %434  ;;  %v1165_v51 = vpop.permute.xlu0 %445 }
  0xe6   : > { %v1167_v52 = vpop.permute.xlu1 %469  ;;  %v1169_v53 = vpop.permute.xlu0 %480 }
  0xea   : > { %v1171_v54 = vpop.permute.xlu1 %499  ;;  %v1173_v55 = vpop.permute.xlu0 %510 }
  0xee   : > { %v1178_v58 = vpop.permute.xlu1 %529  ;;  %v1180_v59 = vpop.permute.xlu0 %540 }
 0x12e   : > { %v297_v0 = vpop.permute.xlu1 %296  ;;  %v299_v3 = vpop.permute.xlu0 %298 }
 0x12f   : > { %v301_v6 = vsel %vm300_vm6, %v297_v0, %v299_v3  ;;  %v302_v7 = vsel %vm300_vm6, %v299_v3, %v297_v0 }
 0x130   : > { %v307_v8 = vsel %vm1182_vm7, %v302_v7, 0.0  ;;  %v308_v9 = vsel %vm1186_vm8, %v301_v6, 0.0 }
 0x131   : > { %v315_v12 = vmul.f32 %v313_v39, %v307_v8  ;;  %v316_v13 = vmul.f32 %v313_v39, %v308_v9  ;;  %v324_v14 = vmul.f32 %v322_v38, %v307_v8  ;;  %v325_v15 = vmul.f32 %v322_v38, %v308_v9 }
 0x132   : > { %v357_v20 = vpop.permute.xlu1 %356  ;;  %v359_v23 = vpop.permute.xlu0 %358  ;;  %v437_v9 = vmul.f32 %v1163_v50, %v1147_v36 }
 0x133   : > { %v343_v28 = vadd.f32 %v341_v18, %v315_v12  ;;  %v344_v29 = vadd.f32 %v342_v19, %v316_v13  ;;  %v360_v30 = vsel %vm300_vm6, %v357_v20, %v359_v23  ;;  %v361_v31 = vsel %vm300_vm6, %v359_v23, %v357_v20 }
 0x134   : > { %v354_v34 = vadd.f32 %v352_v26, %v324_v14  ;;  %v355_v35 = vadd.f32 %v353_v27, %v325_v15  ;;  %v362_v38 = vsel %vm1182_vm7, %v361_v31, 0.0  ;;  %v363_v32 = vsel %vm1186_vm8, %v360_v30, 0.0 }
 0x135   : > { %v371_v39 = vmul.f32 %v369_v42, %v362_v38  ;;  %v372_v33 = vmul.f32 %v369_v42, %v363_v32  ;;  %v382_v40 = vmul.f32 %v380_v43, %v362_v38  ;;  %v383_v41 = vmul.f32 %v380_v43, %v363_v32 }
 0x136   : > { %v488_v44 = vpop.permute.xlu1 %487  ;;  %v490_v45 = vpop.permute.xlu0 %489  ;;  %v426_v42 = vmul.f32 %v1161_v49, %v1061_v1  ;;  %v427_v43 = vmul.f32 %v1161_v49, %v1067_v2  ;;  %v438_v1 = vmul.f32 %v1163_v50, %v1149_v37  ;;  %v448_v2 = vmul.f32 %v1165_v51, %v1147_v36 }
 0x137   : > { %v491_v56 = vsel %vm456_vm9, %v488_v44, %v490_v45  ;;  %v492_v57 = vsel %vm456_vm9, %v490_v45, %v488_v44  ;;  %v373_v60 = vadd.f32 %v371_v39, %v343_v28  ;;  %v374_v62 = vadd.f32 %v372_v33, %v344_v29 }
 0x138   : > { %v384_v61 = vadd.f32 %v382_v40, %v354_v34  ;;  %v385_v63 = vadd.f32 %v383_v41, %v355_v35  ;;  %v493_v0 = vsel %vm1207_vm10, %v491_v56, 0.0  ;;  %v494_v48 = vsel %vm1211_vm11, %v492_v57, 0.0 }
 0x139   : > { %v395_v3 = vadd.f32 %v393_v16, %v373_v60  ;;  %v396_v4 = vadd.f32 %v394_v17, %v374_v62  ;;  %v449_v49 = vmul.f32 %v1165_v51, %v1149_v37  ;;  %v502_v16 = vmul.f32 %v1171_v54, %v493_v0 }
 0x13a   : > { %v406_v5 = vadd.f32 %v404_v24, %v384_v61  ;;  %v407_v6 = vadd.f32 %v405_v25, %v385_v63  ;;  %v453_v7 = vpop.permute.xlu1 %452  ;;  %v455_v8 = vpop.permute.xlu0 %454  ;;  %v503_v17 = vmul.f32 %v1171_v54, %v494_v48  ;;  %v513_v31 = vmul.f32 %v1173_v55, %v493_v0 }
 0x13b   : > { %v417_v12 = vadd.f32 %v415_v46, %v395_v3  ;;  %v418_v13 = vadd.f32 %v416_v47, %v396_v4  ;;  %v457_v18 = vsel %vm456_vm9, %v453_v7, %v455_v8  ;;  %v458_v50 = vsel %vm456_vm9, %v455_v8, %v453_v7 }
 0x13c   : > { %v428_v14 = vadd.f32 %v426_v42, %v406_v5  ;;  %v429_v15 = vadd.f32 %v427_v43, %v407_v6  ;;  %v463_v51 = vsel %vm1207_vm10, %v457_v18, 0.0  ;;  %v464_v25 = vsel %vm1211_vm11, %v458_v50, 0.0 }
 0x13d   : > { %v439_v19 = vadd.f32 %v437_v9, %v417_v12  ;;  %v440_v20 = vadd.f32 %v438_v1, %v418_v13  ;;  %v472_v27 = vmul.f32 %v1167_v52, %v463_v51  ;;  %v473_v28 = vmul.f32 %v1167_v52, %v464_v25 }
 0x13e   : > { %v450_v36 = vadd.f32 %v448_v2, %v428_v14  ;;  %v451_v23 = vadd.f32 %v449_v49, %v429_v15  ;;  %v518_v24 = vpop.permute.xlu1 %517  ;;  %v520_v37 = vpop.permute.xlu0 %519  ;;  %v483_v29 = vmul.f32 %v1169_v53, %v463_v51  ;;  %v484_v30 = vmul.f32 %v1169_v53, %v464_v25 }
 0x13f   : > { %v521_v54 = vsel %vm456_vm9, %v518_v24, %v520_v37  ;;  %v522_v26 = vsel %vm456_vm9, %v520_v37, %v518_v24  ;;  %v514_v34 = vmul.f32 %v1173_v55, %v494_v48  ;;  %v474_v22 = vadd.f32 %v472_v27, %v439_v19 }
 0x140   : > { %v523_v35 = vsel %vm1207_vm10, %v521_v54, 0.0  ;;  %v524_v38 = vsel %vm1211_vm11, %v522_v26, 0.0  ;;  %v475_v32 = vadd.f32 %v473_v28, %v440_v20  ;;  %v485_v39 = vadd.f32 %v483_v29, %v450_v36 }
 0x141   : > { %v486_v33 = vadd.f32 %v484_v30, %v451_v23  ;;  %v532_v52 = vmul.f32 %v1178_v58, %v523_v35  ;;  %v533_v40 = vmul.f32 %v1178_v58, %v524_v38  ;;  %v543_v53 = vmul.f32 %v1180_v59, %v523_v35 }
 0x142   : > { %v544_v41 = vmul.f32 %v1180_v59, %v524_v38  ;;  %v504_v44 = vadd.f32 %v502_v16, %v474_v22  ;;  %v505_v55 = vadd.f32 %v503_v17, %v475_v32  ;;  %v515_v45 = vadd.f32 %v513_v31, %v485_v39 }
 0x143   : > { %v516_v10 = vadd.f32 %v514_v34, %v486_v33  ;;  %v563_v15 = vstv %s562_s7  ;;  %v587_v16 = vstv %s751_s13  ;;  %v569_v37 = vstv %s568_s14 }
 0x144   : > { %v534_v46 = vadd.f32 %v532_v52, %v504_v44  ;;  %v535_v11 = vadd.f32 %v533_v40, %v505_v55  ;;  %v545_v47 = vadd.f32 %v543_v53, %v515_v45  ;;  %v593_v51 = vstv %s1277_s15 }
 0x145   : > { %v546_v56 = vadd.f32 %v544_v41, %v516_v10  ;;  %v938_v25 = vmov 1966171168   ;;  %v599_v38 = vstv %s598_s16  ;;  %v611_v33 = vshrl.u32 %v252_v21, 7 }
 0x146   : > { %v548_v57 = vsel %vm547_vm12, %v534_v46, 0.0  ;;  %v555_v60 = vsel %vm547_vm12, %v535_v11, 0.0  ;;  %v572_v62 = vsel %vm547_vm12, %v545_v47, 0.0  ;;  %v608_v54 = vunpack.c.l.s4 %v938_v25 }
 0x147   : > { %v579_v61 = vsel %vm547_vm12, %v546_v56, 0.0  ;;  %v549_v63 = vrot.slane %v548_v57, 4  ;;  %v556_v42 = vrot.slane %v555_v60, 4  ;;  %v573_v58 = vrot.slane %v572_v62, 4 }
 0x148   : > { %v580_v43 = vrot.slane %v579_v61, 4  ;;  %v609_v39 = vunpack.c.0.s8 %v608_v54 }
 0x149   : > { %v550_v59 = vadd.f32 %v549_v63, %v548_v57  ;;  %v557_v0 = vadd.f32 %v556_v42, %v555_v60  ;;  %v574_v48 = vadd.f32 %v573_v58, %v572_v62 }
 0x14a   : > { %v581_v3 = vadd.f32 %v580_v43, %v579_v61  ;;  %v612_v44 = vsub.s32 %v609_v39, %v611_v33 }
 0x14b   : > { %v551_v4 = vrot.slane %v550_v59, 2  ;;  %v558_v5 = vrot.slane %v557_v0, 2  ;;  %v575_v6 = vrot.slane %v574_v48, 2 }
 0x14c   : > { %v582_v7 = vrot.slane %v581_v3, 2 }
 0x14d   : > { %v552_v8 = vadd.f32 %v551_v4, %v550_v59  ;;  %v559_v9 = vadd.f32 %v558_v5, %v557_v0  ;;  %v576_v1 = vadd.f32 %v575_v6, %v574_v48 }
 0x14e   : > { %v583_v2 = vadd.f32 %v582_v7, %v581_v3 }
 0x14f   : > { %v553_v49 = vrot.slane %v552_v8, 1  ;;  %v560_v12 = vrot.slane %v559_v9, 1  ;;  %v577_v13 = vrot.slane %v576_v1, 1 }
 0x150   : > { %v584_v14 = vrot.slane %v583_v2, 1 }
 0x151   : > { %v554_v17 = vadd.f32 %v553_v49, %v552_v8  ;;  %v561_v18 = vadd.f32 %v560_v12, %v559_v9  ;;  %v578_v50 = vadd.f32 %v577_v13, %v576_v1 }
 0x152   : > { %v585_v19 = vadd.f32 %v584_v14, %v583_v2 }
 0x153   : > { %v564_v20 = vadd.f32 %v563_v15, %v554_v17  ;;  %v565_v36 = vadd.f32 %v563_v15, %v561_v18  ;;  %v588_v23 = vadd.f32 %v587_v16, %v578_v50 }
 0x154   : > { %v589_v24 = vadd.f32 %v587_v16, %v585_v19 }
 0x155   : > { %v566_v26 = vmax.f32 %v564_v20, 0.0  ;;  %v567_v27 = vmax.f32 %v565_v36, 0.0  ;;  %v590_v28 = vmax.f32 %v588_v23, 0.0 }
 0x156   : > { %v591_v29 = vmax.f32 %v589_v24, 0.0 }
 0x157   : > { %v570_v30 = vmul.f32 %v569_v37, %v566_v26  ;;  %v571_v31 = vmul.f32 %v569_v37, %v567_v27  ;;  %v594_v34 = vmul.f32 %v593_v51, %v590_v28 }
 0x158   : > { %v595_v35 = vmul.f32 %v593_v51, %v591_v29 }
 0x159   : > { %v596_v22 = vadd.f32 %v594_v34, %v570_v30 }
 0x15a   : > { %v597_v32 = vadd.f32 %v595_v35, %v571_v31 }
 0x15b   : > { %v600_v52 = vadd.f32 %v599_v38, %v596_v22 }
 0x15c   : > { %v601_v40 = vadd.f32 %v599_v38, %v597_v32 }
 0x15d   : > { %v602_v53 = vmax.f32 %v600_v52, 0.0 }
 0x15e   : > { %v603_v41 = vmax.f32 %v601_v40, 0.0 }
 0x160   : > { %v606_v55 = vcombine.low %v602_v53, %v603_v41 }
 0x162   : > { %v613_v45 = vrot.slane %v606_v55, %v612_v44 }
 0x164   : > { %v620_v10 = vrot.slane %v613_v45, %v612_v44 }
 0x166   : > { %626 = vst.msk [vmem:[%s245_s24] sm:$0x3] %vm624_vm13, %v620_v10 }
 0x167   : > { %872 = shalt.err (!%p869_p1)
}
 0x168   : > { %s873_s7 = scalar_lea.hbm %s1287_s8, 32  ;;  %s877_s15 = scalar_lea.hbm %s1334_s5, 64 }
 0x169   : > { %p874_p2 = scmp.ne.s32.totalorder %s1287_s8, %s873_s7  ;;  %p878_p9 = scmp.lt.u32.totalorder %s1287_s8, %s1334_s5 }
 0x16a   : > { %p879_p5 = scmp.lt.u32.totalorder %s877_s15, %s873_s7  ;;  %p881_p10 = scmp.lt.u32.totalorder %s873_s7, %s1287_s8 }
 0x16b   : > { %p875_p3 = pnand %p874_p2, %p1355_p12 }
 0x16c   : > { %p880_p6 = por %p879_p5, %p878_p9 }
 0x16d   : > { %p876_p4 = pneg %p875_p3 }
 0x16e   : > { %p882_p0 = por %p881_p10, %p880_p6 }
 0x170   : > { %p883_p7 = pnand %p882_p0, %p876_p4 }
 0x172   : > { %886 = shalt.err (!%p883_p7)
}
 0x173   : > { %768 = dma.vmem_to_hbm [thread:$0]  (%p1355_p12), %s1289_s26, 32, %s1287_s8, %s628_s9  }
 0x174 PF: > { %p785_p8 = scmp.ge.s32.totalorder %s929_s23, 2  ;;  %s654_s18 = sand.u32 1, %s917_s20  }
 0x175   : > { %p1356_p11 = scmp.ne.s32.totalorder %s1339_s30, 0  ;;  %s655_s19 = scalar_lea.sflag [#allocation4], %s654_s18 }
 0x177   : > { %p778_p13 = pnand %p785_p8, %p1356_p11 }
 0x179   : > { %912 = dma.done.wait (!%p778_p13), %s655_s19, 32  }
 0x17a   : > { %914 = vsyncadd (!%p778_p13), %s655_s19, 4294967264  ;;  %p18_p1 = scmp.ge.s32.totalorder %s998_s25, 4   ;;  %s1357_s20 = smov %s921_s21 }
 0x17b   : > { %s1358_s21 = smov %s925_s22  ;;  %s1359_s22 = smov %s1009_s28 }
 0x17c   : > { %s1360_s23 = smov %s998_s25  ;;  %20 = sbr.rel (!%p18_p1) target bundleno = 7 (0x7), region = 101 }
 0x183   :  { %660 = vsyncpa [#allocation4], 1 }
 0x184   :  { %662 = vsyncpa [#allocation4 + $0x1], 1 }
 0x185   :  { %663 = vsyncpa [#allocation5], 1 }
 0x186   :  { %665 = vsyncpa [#allocation5 + $0x1], 1 }
 0x187   :  { %666 = vsyncpa [#allocation7], 1 }

</bundles_post_ra>
